<compile_context>
chip_gen: v7x
topology: tpu7x:2x2x1
jax: 0.10.0
libtpu: 0.0.40
codegen_flags: <defaults>
</compile_context>

<pallas_src>
import functools

import jax
import jax.numpy as jnp
from jax import lax
from jax.experimental import pallas as pl
from jax.experimental.pallas import tpu as pltpu


_VMEM_LIMIT_BYTES = 48 * 1024 * 1024  # safe on v5e/v6e (128 MiB) and v7x (64 MiB)


# --------------------------------------------------------------------------- #
# Single-pass fused kernel: whole (Bt, HW, C) slab resident per grid step.
# --------------------------------------------------------------------------- #
def _ca_fused_kernel(x_ref, w1t_ref, w2t_ref, o_ref):
    # x_ref: (Bt, HW, C)   w1t_ref: (C, hidden)   w2t_ref: (hidden, C)
    x = x_ref[...]                                   # input dtype, no full-tile upcast
    bt, hw, _ = x.shape

    # Adaptive pools to 1x1 over the spatial (sublane) axis -> (Bt, C) rows.
    avg_p = jnp.sum(x.astype(jnp.float32), axis=1) * (1.0 / hw)      # f32 accumulation
    max_p = jnp.max(x, axis=1).astype(jnp.float32)

    # Stack avg/max rows -> one MLP pass for both (exact: rows are independent).
    pooled = jnp.concatenate([avg_p, max_p], axis=0)                 # (2*Bt, C)
    h = jnp.dot(pooled, w1t_ref[...].astype(jnp.float32),
                preferred_element_type=jnp.float32)                  # conv1 (1x1, no bias)
    h = jnp.maximum(h, 0.0)                                          # ReLU
    out = jnp.dot(h, w2t_ref[...].astype(jnp.float32),
                  preferred_element_type=jnp.float32)                # conv2 (1x1, no bias)

    gate = jax.nn.sigmoid(out[:bt] + out[bt:])                       # (Bt, C)
    scale = gate.astype(x.dtype)[:, None, :]                         # (Bt, 1, C)

    # Lane-dense broadcast multiply (no transpose of the gate).
    o_ref[...] = (x * scale).astype(o_ref.dtype)


# --------------------------------------------------------------------------- #
# Two-pass path for large feature maps.
# Pass 1: HW-tiled pooling (running sum / running max in VMEM scratch),
#         MLP + sigmoid on the final tile -> per-image (1, C) gate.
# --------------------------------------------------------------------------- #
def _ca_pool_kernel(x_ref, w1t_ref, w2t_ref, scale_ref, sum_acc, max_acc, *, total_hw):
    k = pl.program_id(1)
    nk = pl.num_programs(1)

    @pl.when(k == 0)
    def _():
        sum_acc[...] = jnp.zeros_like(sum_acc)
        max_acc[...] = jnp.full_like(max_acc, -jnp.inf)

    x = x_ref[0]                                     # (hw_tile, C), input dtype
    hw_tile = x.shape[0]

    if total_hw % hw_tile != 0:
        # Mask the padded remainder rows (avg pads with 0, max pads with -inf).
        row = k * hw_tile + lax.broadcasted_iota(jnp.int32, x.shape, 0)
        valid = row < total_hw
        xs = jnp.where(valid, x, 0.0)
        xm = jnp.where(valid, x, -jnp.inf)
    else:
        xs = x
        xm = x

    sum_acc[...] += jnp.sum(xs.astype(jnp.float32), axis=0, keepdims=True)
    max_acc[...] = jnp.maximum(max_acc[...],
                               jnp.max(xm, axis=0, keepdims=True).astype(jnp.float32))

    @pl.when(k == nk - 1)
    def _():
        avg_p = sum_acc[...] * (1.0 / total_hw)                      # (1, C), true HW
        pooled = jnp.concatenate([avg_p, max_acc[...]], axis=0)      # (2, C)
        h = jnp.dot(pooled, w1t_ref[...].astype(jnp.float32),
                    preferred_element_type=jnp.float32)
        h = jnp.maximum(h, 0.0)
        out = jnp.dot(h, w2t_ref[...].astype(jnp.float32),
                      preferred_element_type=jnp.float32)            # (2, C)
        scale_ref[0] = jax.nn.sigmoid(out[:1] + out[1:]).astype(scale_ref.dtype)


# Pass 2: re-stream x in HW tiles and apply the per-channel gate (lane dense).
def _ca_apply_kernel(x_ref, scale_ref, o_ref):
    x = x_ref[...]                                                   # (1, hw_tile, C)
    scale = scale_ref[...].astype(x.dtype)                           # (1, 1, C)
    o_ref[...] = (x * scale).astype(o_ref.dtype)


# --------------------------------------------------------------------------- #
# Wrapper
# --------------------------------------------------------------------------- #
def channel_attention(x, w1, w2, *, vmem_budget_bytes=32 * 1024 * 1024):
    """x: (N, C, H, W) NCHW like PyTorch.
    w1: (hidden, C, 1, 1) conv1 weight, w2: (C, hidden, 1, 1) conv2 weight."""
    N, C, H, W = x.shape
    hidden = w1.shape[0]
    HW = H * W
    itemsize = jnp.dtype(x.dtype).itemsize

    # Lane-dense layout: channels last (lanes), spatial on sublanes.
    x3 = jnp.transpose(x.reshape(N, C, HW), (0, 2, 1))               # (N, HW, C)
    w1t = w1.reshape(hidden, C).T                                    # (C, hidden)
    w2t = w2.reshape(C, hidden).T                                    # (hidden, C)

    slab_bytes = HW * C * itemsize                                   # one image, one buffer
    # Pipeline double-buffers input + output -> ~4x the slab.
    if 4 * slab_bytes <= vmem_budget_bytes:
        # ---------------- single-pass fused path ---------------- #
        bt = max(1, vmem_budget_bytes // (4 * slab_bytes))
        bt = min(bt, N)
        if N > 1:
            bt = min(bt, (N + 1) // 2)   # keep >=2 grid steps (v7x: 2 TensorCores)
        grid = (pl.cdiv(N, bt),)

        out3 = pl.pallas_call(
            _ca_fused_kernel,
            out_shape=jax.ShapeDtypeStruct((N, HW, C), x.dtype),
            grid=grid,
            in_specs=[
                pl.BlockSpec((bt, HW, C), lambda b: (b, 0, 0)),
                pl.BlockSpec((C, hidden), lambda b: (0, 0)),
                pl.BlockSpec((hidden, C), lambda b: (0, 0)),
            ],
            out_specs=pl.BlockSpec((bt, HW, C), lambda b: (b, 0, 0)),
            compiler_params=pltpu.CompilerParams(
                dimension_semantics=("parallel",),
                vmem_limit_bytes=_VMEM_LIMIT_BYTES,
            ),
        )(x3, w1t, w2t)
    else:
        # ---------------- two-pass HW-tiled path ---------------- #
        hw_tile = max(8, (vmem_budget_bytes // (4 * C * itemsize)) // 8 * 8)
        hw_tile = min(hw_tile, ((HW + 7) // 8) * 8)
        num_hw = pl.cdiv(HW, hw_tile)

        # Pass 1: pooled gate per image, (N, 1, C) in f32.
        scale = pl.pallas_call(
            functools.partial(_ca_pool_kernel, total_hw=HW),
            out_shape=jax.ShapeDtypeStruct((N, 1, C), jnp.float32),
            grid=(N, num_hw),
            in_specs=[
                pl.BlockSpec((1, hw_tile, C), lambda n, k: (n, k, 0)),
                pl.BlockSpec((C, hidden), lambda n, k: (0, 0)),
                pl.BlockSpec((hidden, C), lambda n, k: (0, 0)),
            ],
            out_specs=pl.BlockSpec((1, 1, C), lambda n, k: (n, 0, 0)),
            scratch_shapes=[
                pltpu.VMEM((1, C), jnp.float32),   # running sum
                pltpu.VMEM((1, C), jnp.float32),   # running max
            ],
            compiler_params=pltpu.CompilerParams(
                dimension_semantics=("parallel", "arbitrary"),
                vmem_limit_bytes=_VMEM_LIMIT_BYTES,
            ),
        )(x3, w1t, w2t)

        # Pass 2: apply gate, pure streaming.
        out3 = pl.pallas_call(
            _ca_apply_kernel,
            out_shape=jax.ShapeDtypeStruct((N, HW, C), x.dtype),
            grid=(N, num_hw),
            in_specs=[
                pl.BlockSpec((1, hw_tile, C), lambda n, k: (n, k, 0)),
                pl.BlockSpec((1, 1, C), lambda n, k: (n, 0, 0)),
            ],
            out_specs=pl.BlockSpec((1, hw_tile, C), lambda n, k: (n, k, 0)),
            compiler_params=pltpu.CompilerParams(
                dimension_semantics=("parallel", "parallel"),
                vmem_limit_bytes=_VMEM_LIMIT_BYTES,
            ),
        )(x3, scale)

    return jnp.transpose(out3, (0, 2, 1)).reshape(N, C, H, W)


# --------------------------------------------------------------------------- #
# Plain-JAX reference mirroring the PyTorch forward.
# --------------------------------------------------------------------------- #
def reference(x, w1, w2):
    N, C, H, W = x.shape
    hidden = w1.shape[0]
    w1m = w1.reshape(hidden, C)
    w2m = w2.reshape(C, hidden)

    def fc(p):  # p: (N, C)
        h = jnp.maximum(p @ w1m.T, 0.0)
        return h @ w2m.T

    avg_p = jnp.mean(x, axis=(2, 3))
    max_p = jnp.max(x, axis=(2, 3))
    out = fc(avg_p) + fc(max_p)
    scale = jax.nn.sigmoid(out)[:, :, None, None]
    return x * scale


if __name__ == "__main__":
    key = jax.random.PRNGKey(0)
    kx, k1, k2, kx2 = jax.random.split(key, 4)

    N, C, H, W = 2, 32, 16, 16
    ratio = 16
    hidden = C // ratio

    x = jax.random.normal(kx, (N, C, H, W), dtype=jnp.float32)
    # c2_msra_fill == kaiming_normal_(mode="fan_out"): std = sqrt(2 / out_channels).
    w1 = jax.random.normal(k1, (hidden, C, 1, 1), dtype=jnp.float32) * jnp.sqrt(2.0 / hidden)
    w2 = jax.random.normal(k2, (C, hidden, 1, 1), dtype=jnp.float32) * jnp.sqrt(2.0 / C)

    # Single-pass fused path.
    y = jax.block_until_ready(channel_attention(x, w1, w2))
    y_ref = reference(x, w1, w2)
    assert jnp.allclose(y, y_ref, atol=1e-5, rtol=1e-5), "fused path mismatch vs reference"

    # Two-pass HW-tiled path (forced with a tiny VMEM budget), including the
    # masked remainder case (HW = 225 not a multiple of the 128-row tile).
    x_odd = jax.random.normal(kx2, (N, C, 15, 15), dtype=jnp.float32)
    y2 = jax.block_until_ready(
        channel_attention(x_odd, w1, w2, vmem_budget_bytes=64 * 1024))
    y2_ref = reference(x_odd, w1, w2)
    assert jnp.allclose(y2, y2_ref, atol=1e-5, rtol=1e-5), "tiled path mismatch vs reference"

    print("KERNEL_OK")
</pallas_src>

<mosaic_0001>
module attributes {stable_mosaic.version = 11 : i64} {
  func.func @_ca_fused_kernel(%arg0: i32, %arg1: memref<1x256x32xf32, #tpu.memory_space<vmem>>, %arg2: memref<32x2xf32, #tpu.memory_space<vmem>>, %arg3: memref<2x32xf32, #tpu.memory_space<vmem>>, %arg4: memref<1x256x32xf32, #tpu.memory_space<vmem>>) attributes {dimension_semantics = [#tpu.dimension_semantics<parallel>], iteration_bounds = array<i64: 2>, scalar_prefetch = 0 : i64, scratch_operands = 0 : i64, tpu.core_type = #tpu.core_type<tc>, window_params = [{transform_indices = @transform_0, window_bounds = array<i64: 1, 256, 32>}, {pipeline_mode = #tpu.pipeline_mode<synchronous>, transform_indices = @transform_1, window_bounds = array<i64: 32, 2>}, {pipeline_mode = #tpu.pipeline_mode<synchronous>, transform_indices = @transform_2, window_bounds = array<i64: 2, 32>}, {transform_indices = @transform_3, window_bounds = array<i64: 1, 256, 32>}]} {
    %c0 = arith.constant 0 : index
    %c0_0 = arith.constant 0 : index
    %c0_1 = arith.constant 0 : index
    %0 = vector.load %arg1[%c0, %c0_0, %c0_1] : memref<1x256x32xf32, #tpu.memory_space<vmem>>, vector<1x256x32xf32>
    %cst = arith.constant dense<0.000000e+00> : vector<1x32xf32>
    %1 = vector.multi_reduction <add>, %0, %cst [1] : vector<1x256x32xf32> to vector<1x32xf32>
    %cst_2 = arith.constant 3.906250e-03 : f32
    %2 = vector.broadcast %cst_2 : f32 to vector<1x32xf32>
    %3 = arith.mulf %1, %2 : vector<1x32xf32>
    %cst_3 = arith.constant dense<0xFF800000> : vector<1x32xf32>
    %4 = vector.multi_reduction <maximumf>, %0, %cst_3 [1] : vector<1x256x32xf32> to vector<1x32xf32>
    %5 = tpu.concatenate %3, %4 in 0 : vector<1x32xf32>, vector<1x32xf32> -> vector<2x32xf32>
    %c0_4 = arith.constant 0 : index
    %c0_5 = arith.constant 0 : index
    %6 = vector.load %arg2[%c0_4, %c0_5] : memref<32x2xf32, #tpu.memory_space<vmem>>, vector<32x2xf32>
    %cst_6 = arith.constant dense<0.000000e+00> : vector<2x2xf32>
    %7 = tpu.matmul %5, %6, %cst_6 {dimension_numbers = #tpu.dot_dimension_numbers<[1], [0], [0], [1], [0, 0, 1, 1], [], []>} : vector<2x32xf32>, vector<32x2xf32>, vector<2x2xf32> -> vector<2x2xf32>
    %cst_7 = arith.constant 0.000000e+00 : f32
    %8 = vector.broadcast %cst_7 : f32 to vector<2x2xf32>
    %9 = arith.maximumf %7, %8 : vector<2x2xf32>
    %c0_8 = arith.constant 0 : index
    %c0_9 = arith.constant 0 : index
    %10 = vector.load %arg3[%c0_8, %c0_9] : memref<2x32xf32, #tpu.memory_space<vmem>>, vector<2x32xf32>
    %cst_10 = arith.constant dense<0.000000e+00> : vector<2x32xf32>
    %11 = tpu.matmul %9, %10, %cst_10 {dimension_numbers = #tpu.dot_dimension_numbers<[1], [0], [0], [1], [0, 0, 1, 1], [], []>} : vector<2x2xf32>, vector<2x32xf32>, vector<2x32xf32> -> vector<2x32xf32>
    %12 = vector.extract_strided_slice %11 {offsets = [0, 0], sizes = [1, 32], strides = [1, 1]} : vector<2x32xf32> to vector<1x32xf32>
    %13 = vector.extract_strided_slice %11 {offsets = [1, 0], sizes = [1, 32], strides = [1, 1]} : vector<2x32xf32> to vector<1x32xf32>
    %14 = arith.addf %12, %13 : vector<1x32xf32>
    %15 = arith.negf %14 : vector<1x32xf32>
    %16 = math.exp %15 : vector<1x32xf32>
    %cst_11 = arith.constant 1.000000e+00 : f32
    %17 = vector.broadcast %cst_11 : f32 to vector<1x32xf32>
    %18 = arith.addf %17, %16 : vector<1x32xf32>
    %19 = arith.divf %17, %18 : vector<1x32xf32>
    %20 = vector.shape_cast %19 : vector<1x32xf32> to vector<1x1x32xf32>
    %21 = vector.broadcast %20 : vector<1x1x32xf32> to vector<1x256x32xf32>
    %22 = arith.mulf %0, %21 : vector<1x256x32xf32>
    %c0_12 = arith.constant 0 : index
    %c0_13 = arith.constant 0 : index
    %c0_14 = arith.constant 0 : index
    %23 = vector.load %arg4[%c0_12, %c0_13, %c0_14] : memref<1x256x32xf32, #tpu.memory_space<vmem>>, vector<1x256x32xf32>
    tpu.vector_store %arg4[%c0_12, %c0_13, %c0_14], %22 {strides = array<i32>} : memref<1x256x32xf32, #tpu.memory_space<vmem>>, vector<1x256x32xf32>,
    return
  }
  func.func @transform_0(%arg0: i32) -> (i32, i32, i32) {
    %c0_i32 = arith.constant 0 : i32
    %c0_i32_0 = arith.constant 0 : i32
    %c0_i32_1 = arith.constant 0 : i32
    return %arg0, %c0_i32, %c0_i32_0 : i32, i32, i32
  }
  func.func @transform_1(%arg0: i32) -> (i32, i32) {
    %c0_i32 = arith.constant 0 : i32
    %c0_i32_0 = arith.constant 0 : i32
    %c0_i32_1 = arith.constant 0 : i32
    return %c0_i32, %c0_i32_0 : i32, i32
  }
  func.func @transform_2(%arg0: i32) -> (i32, i32) {
    %c0_i32 = arith.constant 0 : i32
    %c0_i32_0 = arith.constant 0 : i32
    %c0_i32_1 = arith.constant 0 : i32
    return %c0_i32, %c0_i32_0 : i32, i32
  }
  func.func @transform_3(%arg0: i32) -> (i32, i32, i32) {
    %c0_i32 = arith.constant 0 : i32
    %c0_i32_0 = arith.constant 0 : i32
    %c0_i32_1 = arith.constant 0 : i32
    return %arg0, %c0_i32, %c0_i32_0 : i32, i32, i32
  }
}

</mosaic_0001>

<bundles_post_ra>
// kernel: tpu_custom_call.1
= control target key start
LH: loop header
LB: loop body
LE: loop exit
PB: predicated region body
PF: predicated region fallthrough
CT: control target
= control target key end

     0   :  { %s727_s12 = smov 0   ;;  %s1091_s0 = inlined_call_operand.vmem [shape: f32[2,256,32], index: 0, kind: input, shape index: {}]   ;;  %s1092_s1 = inlined_call_operand.vmem [shape: f32[32,2], index: 1, kind: input, shape index: {}]   ;;  %s1093_s2 = inlined_call_operand.vmem [shape: f32[2,32], index: 2, kind: input, shape index: {}]   ;;  %s1094_s3 = inlined_call_operand.vmem [shape: f32[2,256,32], index: 3, kind: output, shape index: {}]  }
   0x1 LB: > { %s635_s13 = sadd.s32 4294967295, %s702_s12   ;;  %p639_p0 = scmp.ge.s32.totalorder %s702_s12, 1  ;;  %s702_s12 = sphi %s727_s12, %s13_s12  }
   0x2   : > { %p137_p1 = scmp.lt.s32.totalorder %s702_s12, 3 }
   0x4   : > { %p138_p2 = pnand %p639_p0, %p137_p1 }
   0x5   : > { %v345_v0 = vld [vmem:[%s1092_s1] sm:$0xff] (!%p138_p2)  ;;  %v346_v1 = vld [vmem:[%s1092_s1 + $0x8] sm:$0xff] (!%p138_p2)  ;;  %v347_v2 = vld [vmem:[%s1092_s1 + $0x10] sm:$0xff] (!%p138_p2)  ;;  %v704_v3 = vmov (!%p138_p2), 0.0|0.0   ;;  %vm705_vm0 = vmmov (!%p138_p2), 0   ;;  %v706_v6 = vmov (!%p138_p2), 0.0  }
   0x6   : > { %141 = sbr.rel (%p138_p2) target bundleno = 572 (0x23c), region = 32  ;;  %675 = vmatprep.subr.bf16.mxu0 (!%p138_p2), %v704_v3  ;;  %v676_v4 = vpack.c.bf16 (!%p138_p2), %v346_v1, %v345_v0  ;;  %v348_v5 = vld [vmem:[%s1092_s1 + $0x18] sm:$0xff] (!%p138_p2)  ;;  %667 = vmatprep.mubr.msk.f32.mxu0 (!%p138_p2), %vm705_vm0, %v706_v6  ;;  %p161_p3 = scmp.lt.s32.totalorder (!%p138_p2), %s635_s13, 1  ;;  %vm203_vm1 = vcmask (!%p138_p2), 261120   ;;  %vm343_vm2 = vcmask (!%p138_p2), 1040384   ;;  %vm428_vm3 = vcmask (!%p138_p2), 1041408  }
   0x7   : > { %670 = vmatprep.subr.mxu1 (!%p138_p2), %v706_v6  ;;  %672 = vmatprep.mubr.msk.f32.mxu1 (!%p138_p2), %vm705_vm0, %v706_v6  ;;  %v679_v7 = vpack.c.bf16 (!%p138_p2), %v348_v5, %v347_v2  ;;  %vm424_vm4 = vcmask (!%p138_p2), 15360  }
   0x8   : > { %677 = vmatpush3.bf16.msra.mxu0 (!%p138_p2), %v676_v4 }
   0x9   : > { %678 = vmatprep.subr.bf16.mxu0 (!%p138_p2), %v704_v3 }
   0xc   : > { %680 = vmatpush3.bf16.msra.mxu0 (!%p138_p2), %v679_v7 }
   0xd   : > { %s1096_s13 = smov (!%p161_p3, %s635_s13), 1 }
   0xe   : > { %s650_s22 = sshll.u32 %s1096_s13, 8 }
   0xf   : > { %s755_s25 = scalar_lea.vmem %s1091_s0, %s650_s22  ;;  %s990_s30 = scalar_lea.vmem %s1094_s3, %s650_s22 }
  0x10   : > { %v758_v8 = vld [vmem:[%s755_s25] sm:$0xff]  ;;  %v761_v9 = vld [vmem:[%s755_s25 + $0x8] sm:$0xff]  ;;  %v764_v10 = vld [vmem:[%s755_s25 + $0x10] sm:$0xff] }
  0x11   : > { %v767_v11 = vld [vmem:[%s755_s25 + $0x18] sm:$0xff]  ;;  %v204_v12 = vsel %vm203_vm1, %v758_v8, 0.0  ;;  %v205_v13 = vsel %vm203_vm1, %v761_v9, 0.0  ;;  %v207_v14 = vsel %vm203_vm1, %v764_v10, 0.0  ;;  %v776_v15 = vld [vmem:[%s755_s25 + $0x20] sm:$0xff]  ;;  %v781_v18 = vld [vmem:[%s755_s25 + $0x28] sm:$0xff] }
  0x12   : > { %v206_v16 = vadd.f32 %v205_v13, %v204_v12  ;;  %v209_v17 = vsel %vm203_vm1, %v767_v11, 0.0  ;;  %v211_v20 = vsel %vm203_vm1, %v776_v15, 0.0  ;;  %v786_v21 = vld [vmem:[%s755_s25 + $0x30] sm:$0xff]  ;;  %v213_v23 = vsel %vm203_vm1, %v781_v18, 0.0  ;;  %v791_v24 = vld [vmem:[%s755_s25 + $0x38] sm:$0xff]  ;;  %v794_v26 = vld [vmem:[%s755_s25 + $0x40] sm:$0xff] }
  0x13   : > { %v215_v27 = vsel %vm203_vm1, %v786_v21, 0.0  ;;  %v217_v29 = vsel %vm203_vm1, %v791_v24, 0.0  ;;  %v801_v30 = vld [vmem:[%s755_s25 + $0x48] sm:$0xff]  ;;  %v219_v32 = vsel %vm203_vm1, %v794_v26, 0.0  ;;  %v274_v33 = vsel %vm203_vm1, %v758_v8, -inf  ;;  %v808_v34 = vld [vmem:[%s755_s25 + $0x50] sm:$0xff] }
  0x14   : > { %v208_v19 = vadd.f32 %v207_v14, %v206_v16  ;;  %v275_v35 = vsel %vm203_vm1, %v761_v9, -inf  ;;  %v276_v36 = vsel %vm203_vm1, %v764_v10, -inf  ;;  %v277_v37 = vsel %vm203_vm1, %v767_v11, -inf  ;;  %v827_v44 = vld [vmem:[%s755_s25 + $0x58] sm:$0xff]  ;;  %v832_v48 = vld [vmem:[%s755_s25 + $0x60] sm:$0xff]  ;;  %v845_v58 = vld [vmem:[%s755_s25 + $0x68] sm:$0xff] }
  0x15   : > { %v278_v38 = vsel %vm203_vm1, %v776_v15, -inf  ;;  %v280_v40 = vsel %vm203_vm1, %v781_v18, -inf  ;;  %v282_v41 = vsel %vm203_vm1, %v786_v21, -inf  ;;  %v284_v42 = vsel %vm203_vm1, %v791_v24, -inf  ;;  %v850_v61 = vld [vmem:[%s755_s25 + $0x70] sm:$0xff]  ;;  %v853_v2 = vld [vmem:[%s755_s25 + $0x78] sm:$0xff] }
  0x16   : > { %v210_v22 = vadd.f32 %v209_v17, %v208_v19  ;;  %v221_v43 = vsel %vm203_vm1, %v801_v30, 0.0  ;;  %v223_v46 = vsel %vm203_vm1, %v808_v34, 0.0  ;;  %v279_v47 = vmax.f32 %v274_v33, %v278_v38  ;;  %v866_v13 = vld [vmem:[%s755_s25 + $0x80] sm:$0xff]  ;;  %v871_v17 = vld [vmem:[%s755_s25 + $0x88] sm:$0xff]  ;;  %v874_v19 = vld [vmem:[%s755_s25 + $0x90] sm:$0xff] }
  0x17   : > { %v281_v49 = vmax.f32 %v275_v35, %v280_v40  ;;  %v283_v50 = vmax.f32 %v276_v36, %v282_v41  ;;  %v285_v51 = vmax.f32 %v277_v37, %v284_v42  ;;  %v286_v52 = vsel %vm203_vm1, %v794_v26, -inf  ;;  %v890_v37 = vld [vmem:[%s755_s25 + $0xa0] sm:$0xff]  ;;  %v893_v38 = vld [vmem:[%s755_s25 + $0xa8] sm:$0xff] }
  0x18   : > { %v212_v25 = vadd.f32 %v211_v20, %v210_v22  ;;  %v288_v54 = vsel %vm203_vm1, %v801_v30, -inf  ;;  %v290_v55 = vsel %vm203_vm1, %v808_v34, -inf  ;;  %v292_v56 = vsel %vm203_vm1, %v827_v44, -inf }
  0x19   : > { %v225_v57 = vsel %vm203_vm1, %v827_v44, 0.0  ;;  %v227_v60 = vsel %vm203_vm1, %v832_v48, 0.0  ;;  %v287_v62 = vmax.f32 %v279_v47, %v286_v52  ;;  %v289_v63 = vmax.f32 %v281_v49, %v288_v54  ;;  %v914_v54 = vld [vmem:[%s755_s25 + $0xc0] sm:$0xff] }
  0x1a   : > { %v214_v28 = vadd.f32 %v213_v23, %v212_v25  ;;  %v291_v0 = vmax.f32 %v283_v50, %v290_v55  ;;  %v293_v1 = vmax.f32 %v285_v51, %v292_v56  ;;  %v294_v4 = vsel %vm203_vm1, %v832_v48, -inf  ;;  %v917_v56 = vld [vmem:[%s755_s25 + $0xc8] sm:$0xff] }
  0x1b   : > { %v296_v5 = vsel %vm203_vm1, %v845_v58, -inf  ;;  %v298_v6 = vsel %vm203_vm1, %v850_v61, -inf  ;;  %v229_v7 = vsel %vm203_vm1, %v845_v58, 0.0  ;;  %v300_v12 = vsel %vm203_vm1, %v853_v2, -inf }
  0x1c   : > { %v216_v31 = vadd.f32 %v215_v27, %v214_v28  ;;  %v231_v16 = vsel %vm203_vm1, %v850_v61, 0.0  ;;  %v295_v20 = vmax.f32 %v287_v62, %v294_v4  ;;  %v297_v22 = vmax.f32 %v289_v63, %v296_v5  ;;  %v879_v27 = vld [vmem:[%s755_s25 + $0x98] sm:$0xff]  ;;  %v924_v63 = vld [vmem:[%s755_s25 + $0xd0] sm:$0xff] }
  0x1d   : > { %v299_v23 = vmax.f32 %v291_v0, %v298_v6  ;;  %v302_v25 = vsel %vm203_vm1, %v866_v13, -inf  ;;  %v233_v33 = vsel %vm203_vm1, %v853_v2, 0.0  ;;  %v308_v35 = vsel %vm203_vm1, %v879_v27, -inf  ;;  %v927_v0 = vld [vmem:[%s755_s25 + $0xd8] sm:$0xff] }
  0x1e   : > { %v218_v39 = vadd.f32 %v217_v29, %v216_v31  ;;  %v301_v29 = vmax.f32 %v293_v1, %v300_v12  ;;  %v304_v31 = vsel %vm203_vm1, %v871_v17, -inf  ;;  %v303_v40 = vmax.f32 %v295_v20, %v302_v25 }
  0x1f   : > { %v305_v41 = vmax.f32 %v297_v22, %v304_v31  ;;  %v310_v49 = vsel %vm203_vm1, %v890_v37, -inf  ;;  %v312_v50 = vsel %vm203_vm1, %v893_v38, -inf  ;;  %v237_v51 = vsel %vm203_vm1, %v871_v17, 0.0  ;;  %v944_v22 = vld [vmem:[%s755_s25 + $0xe0] sm:$0xff] }
  0x20   : > { %v220_v45 = vadd.f32 %v219_v32, %v218_v39  ;;  %v306_v32 = vsel %vm203_vm1, %v874_v19, -inf  ;;  %v235_v39 = vsel %vm203_vm1, %v866_v13, 0.0  ;;  %v309_v47 = vmax.f32 %v301_v29, %v308_v35  ;;  %v949_v29 = vld [vmem:[%s755_s25 + $0xe8] sm:$0xff] }
  0x21   : > { %v307_v42 = vmax.f32 %v299_v23, %v306_v32  ;;  %v318_v62 = vsel %vm203_vm1, %v914_v54, -inf  ;;  %v320_v5 = vsel %vm203_vm1, %v917_v56, -inf  ;;  %v241_v6 = vsel %vm203_vm1, %v879_v27, 0.0 }
  0x22   : > { %v222_v53 = vadd.f32 %v221_v43, %v220_v45  ;;  %v898_v43 = vld [vmem:[%s755_s25 + $0xb0] sm:$0xff]  ;;  %v901_v45 = vld [vmem:[%s755_s25 + $0xb8] sm:$0xff]  ;;  %v324_v12 = vsel %vm203_vm1, %v927_v0, -inf  ;;  %v243_v23 = vsel %vm203_vm1, %v890_v37, 0.0  ;;  %v326_v35 = vsel %vm203_vm1, %v944_v22, -inf }
  0x23   : > { %v314_v52 = vsel %vm203_vm1, %v898_v43, -inf }
  0x24   : > { %v224_v59 = vadd.f32 %v223_v46, %v222_v53  ;;  %v316_v53 = vsel %vm203_vm1, %v901_v45, -inf }
  0x25   : > { %v317_v4 = vmax.f32 %v309_v47, %v316_v53  ;;  %v249_v53 = vsel %vm203_vm1, %v901_v45, 0.0 }
  0x26   : > { %v226_v3 = vadd.f32 %v225_v57, %v224_v59  ;;  %v239_v57 = vsel %vm203_vm1, %v874_v19, 0.0  ;;  %v311_v59 = vmax.f32 %v303_v40, %v310_v49 }
  0x28   : > { %v228_v14 = vadd.f32 %v227_v60, %v226_v3  ;;  %v313_v60 = vmax.f32 %v305_v41, %v312_v50  ;;  %v315_v3 = vmax.f32 %v307_v42, %v314_v52  ;;  %v319_v25 = vmax.f32 %v311_v59, %v318_v62 }
  0x2a   : > { %v230_v28 = vadd.f32 %v229_v7, %v228_v14  ;;  %v322_v7 = vsel %vm203_vm1, %v924_v63, -inf  ;;  %v938_v14 = vld [vmem:[%s755_s25 + $0xf0] sm:$0xff]  ;;  %v327_v47 = vmax.f32 %v319_v25, %v326_v35 }
  0x2b   : > { %v323_v32 = vmax.f32 %v315_v3, %v322_v7  ;;  %v330_v40 = vsel %vm203_vm1, %v938_v14, -inf  ;;  %v257_v7 = vsel %vm203_vm1, %v927_v0, 0.0 }
  0x2c   : > { %v232_v36 = vadd.f32 %v231_v16, %v230_v28  ;;  %v941_v16 = vld [vmem:[%s755_s25 + $0xf8] sm:$0xff]  ;;  %v321_v28 = vmax.f32 %v313_v60, %v320_v5 }
  0x2d   : > { %v332_v41 = vsel %vm203_vm1, %v941_v16, -inf }
  0x2e   : > { %v234_v46 = vadd.f32 %v233_v33, %v232_v36  ;;  %v325_v33 = vmax.f32 %v317_v4, %v324_v12  ;;  %v245_v36 = vsel %vm203_vm1, %v893_v38, 0.0  ;;  %v255_v4 = vsel %vm203_vm1, %v924_v63, 0.0 }
  0x30   : > { %v236_v55 = vadd.f32 %v235_v39, %v234_v46  ;;  %v328_v39 = vsel %vm203_vm1, %v949_v29, -inf  ;;  %v247_v46 = vsel %vm203_vm1, %v898_v43, 0.0  ;;  %v333_v52 = vmax.f32 %v325_v33, %v332_v41 }
  0x31   : > { %v329_v50 = vmax.f32 %v321_v28, %v328_v39  ;;  %v261_v28 = vsel %vm203_vm1, %v949_v29, 0.0 }
  0x32   : > { %v238_v1 = vadd.f32 %v237_v51, %v236_v55  ;;  %v331_v51 = vmax.f32 %v323_v32, %v330_v40  ;;  %v263_v32 = vsel %vm203_vm1, %v938_v14, 0.0 }
  0x33   : > { %v334_v60 = vmax.f32 %v327_v47, %v329_v50 }
  0x34   : > { %v240_v20 = vadd.f32 %v239_v57, %v238_v1  ;;  %v251_v57 = vsel %vm203_vm1, %v914_v54, 0.0  ;;  %v335_v62 = vmax.f32 %v331_v51, %v333_v52  ;;  %v253_v1 = vsel %vm203_vm1, %v917_v56, 0.0 }
  0x36   : > { %v242_v31 = vadd.f32 %v241_v6, %v240_v20  ;;  %v336_v6 = vmax.f32 %v334_v60, %v335_v62  ;;  %v259_v20 = vsel %vm203_vm1, %v944_v22, 0.0  ;;  %v423_v60 = vld [vmem:[%s1093_s2] sm:$0x3] }
  0x37   : > { %671 = vmatpush3.msk.msra.mxu1 %vm428_vm3, %v423_v60 }
  0x38   : > { %v244_v42 = vadd.f32 %v243_v23, %v242_v31  ;;  %v337_v25 = vrot.slane %v336_v6, 4 }
  0x3a   : > { %v246_v49 = vadd.f32 %v245_v36, %v244_v42  ;;  %v338_v35 = vmax.f32 %v336_v6, %v337_v25  ;;  %v265_v36 = vsel %vm203_vm1, %v941_v16, 0.0  ;;  %v512_v25 = vlaneseq }
  0x3c   : > { %v248_v55 = vadd.f32 %v247_v46, %v246_v49  ;;  %v339_v41 = vrot.slane %v338_v35, 2 }
  0x3e   : > { %v250_v59 = vadd.f32 %v249_v53, %v248_v55  ;;  %v340_v47 = vmax.f32 %v338_v35, %v339_v41 }
  0x40   : > { %v252_v3 = vadd.f32 %v251_v57, %v250_v59  ;;  %v341_v51 = vrot.slane %v340_v47, 1 }
  0x42   : > { %v254_v5 = vadd.f32 %v253_v1, %v252_v3  ;;  %v342_v55 = vmax.f32 %v340_v47, %v341_v51 }
  0x44   : > { %v256_v12 = vadd.f32 %v255_v4, %v254_v5 }
  0x46   : > { %v258_v23 = vadd.f32 %v257_v7, %v256_v12 }
  0x48   : > { %v260_v31 = vadd.f32 %v259_v20, %v258_v23 }
  0x4a   : > { %v262_v33 = vadd.f32 %v261_v28, %v260_v31  ;;  %v513_v28 = vshrl.u32 %v512_v25, 7 }
  0x4c   : > { %v264_v39 = vadd.f32 %v263_v32, %v262_v33  ;;  %v514_v31 = vsub.s32 0, %v513_v28 }
  0x4e   : > { %v266_v40 = vadd.f32 %v265_v36, %v264_v39 }
  0x50   : > { %v267_v42 = vrot.slane %v266_v40, 4 }
  0x52   : > { %v268_v46 = vadd.f32 %v267_v42, %v266_v40 }
  0x54   : > { %v269_v49 = vrot.slane %v268_v46, 2 }
  0x56   : > { %v270_v50 = vadd.f32 %v269_v49, %v268_v46 }
  0x58   : > { %v271_v52 = vrot.slane %v270_v50, 1 }
  0x5a   : > { %v272_v53 = vadd.f32 %v271_v52, %v270_v50 }
  0x5c   : > { %v273_v57 = vmul.f32 0.00390625, %v272_v53 }
  0x5e   : > { %v344_v59 = vsel %vm343_vm2, %v273_v57, %v342_v55 }
  0x5f   : > { %668 = vmatmul.mubr.msk.f32.vlgmr.msra.gmra.mrb[0].mxu0 %vm203_vm1, %v344_v59 }
 0x132   : > { %v418_v62 = vpop.f32.mrb[0].mxu0 }
 0x133   : > { %v422_v1 = vmax.f32 %v418_v62, 0.0  ;;  %v669_v3 = vpop.f32.mrb[1].mxu0 }
 0x135   : > { %673 = vmatmul.mubr.msk.f32.vlgmr.msra.gmra.mrb[0].mxu1 %vm424_vm4, %v422_v1 }
 0x208   : > { %v498_v4 = vpop.f32.mrb[0].mxu1 }
 0x209   : > { %v503_v5 = vrot.slane %v498_v4, 1  ;;  %v674_v6 = vpop.f32.mrb[1].mxu1 }
 0x20b   : > { %v505_v7 = vadd.f32 %v503_v5, %v498_v4 }
 0x20d   : > { %v647_v12 = vmul.f32 -1.442695, %v505_v7 }
 0x20f   : > { %692 = vpow2.f32 %v647_v12 }
 0x219   : > { %v693_v20 = vpop.eup %692 }
 0x21a   : > { %v509_v23 = vadd.f32 1.0, %v693_v20 }
 0x21c   : > { %694 = vrcp.f32 %v509_v23 }
 0x226   : > { %v695_v32 = vpop.eup %694 }
 0x227   : > { %v515_v33 = vrot.slane %v695_v32, %v514_v31 }
 0x229   : > { %v516_v35 = vmul.f32 %v515_v33, %v758_v8  ;;  %v517_v36 = vmul.f32 %v515_v33, %v761_v9  ;;  %v518_v39 = vmul.f32 %v515_v33, %v764_v10  ;;  %v519_v40 = vmul.f32 %v515_v33, %v767_v11 }
 0x22a   : > { %v520_v41 = vmul.f32 %v515_v33, %v776_v15  ;;  %v521_v42 = vmul.f32 %v515_v33, %v781_v18  ;;  %v522_v46 = vmul.f32 %v515_v33, %v786_v21  ;;  %v523_v47 = vmul.f32 %v515_v33, %v791_v24 }
 0x22b   : > { %v524_v8 = vmul.f32 %v515_v33, %v794_v26  ;;  %v525_v9 = vmul.f32 %v515_v33, %v801_v30  ;;  %v526_v10 = vmul.f32 %v515_v33, %v808_v34  ;;  %v527_v11 = vmul.f32 %v515_v33, %v827_v44  ;;  %548 = vst.msk [vmem:[%s990_s30] sm:$0xff] %vm203_vm1, %v516_v35 }
 0x22c   : > { %549 = vst.msk [vmem:[%s990_s30 + $0x8] sm:$0xff] %vm203_vm1, %v517_v36  ;;  %550 = vst.msk [vmem:[%s990_s30 + $0x10] sm:$0xff] %vm203_vm1, %v518_v39  ;;  %v528_v15 = vmul.f32 %v515_v33, %v832_v48  ;;  %v529_v18 = vmul.f32 %v515_v33, %v845_v58  ;;  %v530_v21 = vmul.f32 %v515_v33, %v850_v61 }
 0x22d   : > { %551 = vst.msk [vmem:[%s990_s30 + $0x18] sm:$0xff] %vm203_vm1, %v519_v40  ;;  %v531_v24 = vmul.f32 %v515_v33, %v853_v2  ;;  %552 = vst.msk [vmem:[%s990_s30 + $0x20] sm:$0xff] %vm203_vm1, %v520_v41  ;;  %v532_v26 = vmul.f32 %v515_v33, %v866_v13  ;;  %v533_v30 = vmul.f32 %v515_v33, %v871_v17 }
 0x22e   : > { %553 = vst.msk [vmem:[%s990_s30 + $0x28] sm:$0xff] %vm203_vm1, %v521_v42  ;;  %554 = vst.msk [vmem:[%s990_s30 + $0x30] sm:$0xff] %vm203_vm1, %v522_v46  ;;  %v534_v34 = vmul.f32 %v515_v33, %v874_v19  ;;  %v535_v44 = vmul.f32 %v515_v33, %v879_v27  ;;  %v536_v48 = vmul.f32 %v515_v33, %v890_v37 }
 0x22f   : > { %555 = vst.msk [vmem:[%s990_s30 + $0x38] sm:$0xff] %vm203_vm1, %v523_v47  ;;  %556 = vst.msk [vmem:[%s990_s30 + $0x40] sm:$0xff] %vm203_vm1, %v524_v8  ;;  %v537_v58 = vmul.f32 %v515_v33, %v893_v38  ;;  %v538_v61 = vmul.f32 %v515_v33, %v898_v43  ;;  %v539_v2 = vmul.f32 %v515_v33, %v901_v45 }
 0x230   : > { %557 = vst.msk [vmem:[%s990_s30 + $0x48] sm:$0xff] %vm203_vm1, %v525_v9  ;;  %558 = vst.msk [vmem:[%s990_s30 + $0x50] sm:$0xff] %vm203_vm1, %v526_v10  ;;  %v540_v13 = vmul.f32 %v515_v33, %v914_v54  ;;  %v541_v17 = vmul.f32 %v515_v33, %v917_v56  ;;  %v542_v19 = vmul.f32 %v515_v33, %v924_v63 }
 0x231   : > { %559 = vst.msk [vmem:[%s990_s30 + $0x58] sm:$0xff] %vm203_vm1, %v527_v11  ;;  %560 = vst.msk [vmem:[%s990_s30 + $0x60] sm:$0xff] %vm203_vm1, %v528_v15  ;;  %v543_v27 = vmul.f32 %v515_v33, %v927_v0  ;;  %v544_v37 = vmul.f32 %v515_v33, %v944_v22  ;;  %v545_v38 = vmul.f32 %v515_v33, %v949_v29 }
 0x232   : > { %561 = vst.msk [vmem:[%s990_s30 + $0x68] sm:$0xff] %vm203_vm1, %v529_v18  ;;  %562 = vst.msk [vmem:[%s990_s30 + $0x70] sm:$0xff] %vm203_vm1, %v530_v21  ;;  %v546_v43 = vmul.f32 %v515_v33, %v938_v14  ;;  %v547_v45 = vmul.f32 %v515_v33, %v941_v16 }
 0x233   : > { %563 = vst.msk [vmem:[%s990_s30 + $0x78] sm:$0xff] %vm203_vm1, %v531_v24  ;;  %564 = vst.msk [vmem:[%s990_s30 + $0x80] sm:$0xff] %vm203_vm1, %v532_v26 }
 0x234   : > { %565 = vst.msk [vmem:[%s990_s30 + $0x88] sm:$0xff] %vm203_vm1, %v533_v30  ;;  %566 = vst.msk [vmem:[%s990_s30 + $0x90] sm:$0xff] %vm203_vm1, %v534_v34 }
 0x235   : > { %567 = vst.msk [vmem:[%s990_s30 + $0x98] sm:$0xff] %vm203_vm1, %v535_v44  ;;  %568 = vst.msk [vmem:[%s990_s30 + $0xa0] sm:$0xff] %vm203_vm1, %v536_v48 }
 0x236   : > { %569 = vst.msk [vmem:[%s990_s30 + $0xa8] sm:$0xff] %vm203_vm1, %v537_v58  ;;  %570 = vst.msk [vmem:[%s990_s30 + $0xb0] sm:$0xff] %vm203_vm1, %v538_v61 }
 0x237   : > { %571 = vst.msk [vmem:[%s990_s30 + $0xb8] sm:$0xff] %vm203_vm1, %v539_v2  ;;  %572 = vst.msk [vmem:[%s990_s30 + $0xc0] sm:$0xff] %vm203_vm1, %v540_v13 }
 0x238   : > { %573 = vst.msk [vmem:[%s990_s30 + $0xc8] sm:$0xff] %vm203_vm1, %v541_v17  ;;  %574 = vst.msk [vmem:[%s990_s30 + $0xd0] sm:$0xff] %vm203_vm1, %v542_v19 }
 0x239   : > { %575 = vst.msk [vmem:[%s990_s30 + $0xd8] sm:$0xff] %vm203_vm1, %v543_v27  ;;  %576 = vst.msk [vmem:[%s990_s30 + $0xe0] sm:$0xff] %vm203_vm1, %v544_v37 }
 0x23a   : > { %577 = vst.msk [vmem:[%s990_s30 + $0xe8] sm:$0xff] %vm203_vm1, %v545_v38  ;;  %578 = vst.msk [vmem:[%s990_s30 + $0xf0] sm:$0xff] %vm203_vm1, %v546_v43 }
 0x23b   : > { %579 = vst.msk [vmem:[%s990_s30 + $0xf8] sm:$0xff] %vm203_vm1, %v547_v45 }
 0x23c PF: > { %s13_s12 = sadd.s32 1, %s702_s12  }
 0x23d   : > { %p10_p4 = scmp.ge.s32.totalorder %s13_s12, 4  }
 0x23f   :  { %12 = sbr.rel (!%p10_p4) target bundleno = 1 (0x1), region = 62 }

</bundles_post_ra>
